<compile_context>
chip_gen: v7x
topology: tpu7x:2x2x1
jax: 0.10.0
libtpu: 0.0.40
codegen_flags: <defaults>
</compile_context>

<pallas_src>
import functools

import jax
import jax.numpy as jnp
from jax import lax
from jax.experimental import pallas as pl
from jax.experimental.pallas import tpu as pltpu

LANE = 128


def _round_up(v, m):
    return ((v + m - 1) // m) * m


def _vmem_budget():
    """Generation-aware scoped-VMEM limit (~75% of physical, safe fallback)."""
    cap = None
    try:
        info = pltpu.get_tpu_info()
        for name in ("vmem_capacity_bytes", "vmem_bytes", "vmem_capacity"):
            cap = getattr(info, name, None)
            if cap:
                break
    except Exception:
        cap = None
    if not cap:
        cap = 64 * 1024 * 1024          # v7x floor; safe on every generation
    cap = int(cap)
    limit = min(int(cap * 0.75), 112 * 1024 * 1024)
    return cap, limit


# ----------------------------------------------------------------------------
# Tile selection
# ----------------------------------------------------------------------------
def _pick_gin_tile(n_pad, d_max, cap, limit):
    """Largest 128-multiple divisor of n_pad that fits the VMEM budget,
    preferring >=2 row tiles (v7x has 2 TensorCores)."""
    m = n_pad // LANE
    divisors = sorted({LANE * d for d in range(1, m + 1) if m % d == 0},
                      reverse=True)
    max_tile = 2048 if cap > 96 * 1024 * 1024 else 1024
    budget = int(limit * 0.85)

    def footprint(t):
        a_bufs = 2 * t * t                      # int8 A, double-buffered
        x_res = n_pad * d_max * 2               # resident bf16 X (single buffer)
        acc = t * d_max * 4                     # f32 accumulator scratch
        out = 2 * t * d_max * 2                 # bf16 output, double-buffered
        weights = 4 * d_max * d_max * 2         # generous bound for W1/W2/b
        return a_bufs + x_res + acc + out + weights + (2 << 20)

    best = None
    for t in divisors:
        if t > max_tile or footprint(t) > budget:
            continue
        if best is None:
            best = t
        if n_pad // t >= 2:                     # megacore-friendly
            return t
    return best if best is not None else LANE


def _pick_pool_tile(n_pad, chw, c_pad, limit):
    """Pool tile sized from C*HW under the VMEM budget (independent of A tile)."""
    budget = int(limit * 0.85)
    for t in (2048, 1024, 512, 256, 128, 64, 32, 16, 8):
        if n_pad % t != 0:
            continue
        fp = 2 * t * chw * 4 + 2 * t * c_pad * 2 + chw * c_pad * 2 + (1 << 20)
        if fp <= budget:
            return t
    return 8


# ----------------------------------------------------------------------------
# Kernel 1: adaptive_avg_pool2d(x,(1,1)).view(N,-1), fused pad + bf16 cast.
# Lane-dense 2-D matmul form: pooled = bf16(X2D) @ P, P is the (CHW, c_pad)
# averaging matrix (1/HW entries, zero pad lanes).
# ----------------------------------------------------------------------------
def _pool_kernel(x_ref, p_ref, o_ref):
    o_ref[...] = jnp.dot(x_ref[...].astype(jnp.bfloat16), p_ref[...],
                         preferred_element_type=jnp.float32).astype(o_ref.dtype)


def global_avg_pool(x2d, p_mat, pool_tile, vmem_limit):
    n_pad, chw = x2d.shape
    c_pad = p_mat.shape[1]
    return pl.pallas_call(
        _pool_kernel,
        out_shape=jax.ShapeDtypeStruct((n_pad, c_pad), jnp.bfloat16),
        grid_spec=pltpu.PrefetchScalarGridSpec(
            num_scalar_prefetch=0,
            grid=(n_pad // pool_tile,),
            in_specs=[
                pl.BlockSpec((pool_tile, chw), lambda i: (i, 0)),
                pl.BlockSpec((chw, c_pad), lambda i: (0, 0),
                             pipeline_mode=pl.Buffered(1)),
            ],
            out_specs=pl.BlockSpec((pool_tile, c_pad), lambda i: (i, 0))),
        compiler_params=pltpu.CompilerParams(
            dimension_semantics=("parallel",),
            vmem_limit_bytes=vmem_limit),
    )(x2d, p_mat)


# ----------------------------------------------------------------------------
# Kernel 2: one fused GIN layer.
#   agg = A @ x + x          (GINConv, eps = 0; A streamed as int8)
#   out = relu( W2_eff^T relu( W1_eff^T agg + b1_eff ) + b2_eff )
# X is fully resident in VMEM; BN folded into W/b (eval mode); dropout is
# identity in eval mode.
# ----------------------------------------------------------------------------
def _gin_layer_kernel(a_ref, x_ref, w1_ref, b1_ref, w2_ref, b2_ref,
                      o_ref, acc_ref, *, tm, tk, epi_rows):
    i = pl.program_id(0)
    k = pl.program_id(1)

    @pl.when(k == 0)
    def _():
        # Self term (1 + eps) * x with eps = 0, from the resident X.
        r0 = pl.multiple_of(i * tm, LANE)
        acc_ref[...] = x_ref[pl.ds(r0, tm), :].astype(jnp.float32)

    # int8 A tile -> bf16 in-kernel (halves HBM bytes for the dominant stream).
    a = a_ref[...].astype(jnp.float32).astype(jnp.bfloat16)
    c0 = pl.multiple_of(k * tk, LANE)
    acc_ref[...] += jnp.dot(a, x_ref[pl.ds(c0, tk), :],
                            preferred_element_type=jnp.float32)

    @pl.when(k == pl.num_programs(1) - 1)
    def _():
        # Fused MLP epilogue, chunked over rows to bound vreg pressure.
        # TODO(synk): gin_dropout omitted (module evaluated in eval mode).
        def body(c, carry):
            r = pl.multiple_of(c * epi_rows, LANE)
            agg = acc_ref[pl.ds(r, epi_rows), :].astype(jnp.bfloat16)
            h = jnp.dot(agg, w1_ref[...], preferred_element_type=jnp.float32)
            h = jnp.maximum(h + b1_ref[...], 0.0)
            out = jnp.dot(h.astype(jnp.bfloat16), w2_ref[...],
                          preferred_element_type=jnp.float32)
            out = jnp.maximum(out + b2_ref[...], 0.0)      # outer F.relu
            o_ref[pl.ds(r, epi_rows), :] = out.astype(o_ref.dtype)
            return carry

        lax.fori_loop(0, tm // epi_rows, body, 0, unroll=True)


def gin_layer(a, x, w1, b1, w2, b2, tm, tk, vmem_limit):
    n_pad = a.shape[0]
    d_in = x.shape[1]
    d_hid = w1.shape[1]
    d_out = w2.shape[1]
    epi_rows = 256 if tm % 256 == 0 else LANE
    epi_rows = min(epi_rows, tm)
    kernel = functools.partial(_gin_layer_kernel, tm=tm, tk=tk, epi_rows=epi_rows)
    return pl.pallas_call(
        kernel,
        out_shape=jax.ShapeDtypeStruct((n_pad, d_out), jnp.bfloat16),
        grid_spec=pltpu.PrefetchScalarGridSpec(
            num_scalar_prefetch=0,
            grid=(n_pad // tm, n_pad // tk),
            in_specs=[
                pl.BlockSpec((tm, tk), lambda i, k: (i, k)),             # A int8
                pl.BlockSpec((n_pad, d_in), lambda i, k: (0, 0),         # X resident
                             pipeline_mode=pl.Buffered(1)),
                pl.BlockSpec((d_in, d_hid), lambda i, k: (0, 0),
                             pipeline_mode=pl.Buffered(1)),
                pl.BlockSpec((1, d_hid), lambda i, k: (0, 0),
                             pipeline_mode=pl.Buffered(1)),
                pl.BlockSpec((d_hid, d_out), lambda i, k: (0, 0),
                             pipeline_mode=pl.Buffered(1)),
                pl.BlockSpec((1, d_out), lambda i, k: (0, 0),
                             pipeline_mode=pl.Buffered(1)),
            ],
            out_specs=pl.BlockSpec((tm, d_out), lambda i, k: (i, 0)),
            scratch_shapes=[pltpu.VMEM((tm, d_in), jnp.float32)]),
        compiler_params=pltpu.CompilerParams(
            dimension_semantics=("parallel", "arbitrary"),
            vmem_limit_bytes=vmem_limit),
    )(a, x, w1, b1, w2, b2)


# ----------------------------------------------------------------------------
# Kernel 3: global_mean_pool (normalized assignment matmul over N tiles) fused
# with both gleason heads packed into one full-width matmul.
# ----------------------------------------------------------------------------
def _readout_kernel(m_ref, x_ref, w_ref, b_ref, o_ref, acc_ref):
    k = pl.program_id(0)

    @pl.when(k == 0)
    def _():
        acc_ref[...] = jnp.zeros_like(acc_ref)

    acc_ref[...] += jnp.dot(m_ref[...], x_ref[...],
                            preferred_element_type=jnp.float32)

    @pl.when(k == pl.num_programs(0) - 1)
    def _():
        # TODO(synk): final_dropout omitted (eval mode).
        g = acc_ref[...].astype(jnp.bfloat16)
        o_ref[...] = (jnp.dot(g, w_ref[...], preferred_element_type=jnp.float32)
                      + b_ref[...]).astype(o_ref.dtype)


def readout_and_heads(pool_mat, x, w_heads, b_heads, tile, vmem_limit):
    g_pad, n_pad = pool_mat.shape
    d = x.shape[1]
    c2 = w_heads.shape[1]
    return pl.pallas_call(
        _readout_kernel,
        out_shape=jax.ShapeDtypeStruct((g_pad, c2), jnp.float32),
        grid_spec=pltpu.PrefetchScalarGridSpec(
            num_scalar_prefetch=0,
            grid=(n_pad // tile,),
            in_specs=[
                pl.BlockSpec((g_pad, tile), lambda k: (0, k)),
                pl.BlockSpec((tile, d), lambda k: (k, 0)),
                pl.BlockSpec((d, c2), lambda k: (0, 0),
                             pipeline_mode=pl.Buffered(1)),
                pl.BlockSpec((1, c2), lambda k: (0, 0),
                             pipeline_mode=pl.Buffered(1)),
            ],
            out_specs=pl.BlockSpec((g_pad, c2), lambda k: (0, 0)),
            scratch_shapes=[pltpu.VMEM((g_pad, d), jnp.float32)]),
        compiler_params=pltpu.CompilerParams(
            dimension_semantics=("arbitrary",),
            vmem_limit_bytes=vmem_limit),
    )(pool_mat, x, w_heads, b_heads)


# ----------------------------------------------------------------------------
# Parameter construction (deterministic, mimics the module's __init__ shapes).
# BN (eval) folded into weights/biases; everything stored padded & lane-dense.
# ----------------------------------------------------------------------------
def _linear_init(key, fan_in, fan_out):
    kw, kb = jax.random.split(key)
    bound = 1.0 / jnp.sqrt(fan_in)
    w = jax.random.uniform(kw, (fan_in, fan_out), jnp.float32, -bound, bound)
    b = jax.random.uniform(kb, (fan_out,), jnp.float32, -bound, bound)
    return w, b


def _fold_bn(w, b, dim, eps=1e-5):
    # BatchNorm1d at eval with default init: gamma=1, beta=0, mean=0, var=1.
    # TODO(synk): fold real running stats here for a trained checkpoint.
    gamma = jnp.ones((dim,), jnp.float32)
    beta = jnp.zeros((dim,), jnp.float32)
    mean = jnp.zeros((dim,), jnp.float32)
    var = jnp.ones((dim,), jnp.float32)
    scale = gamma / jnp.sqrt(var + eps)
    return w * scale[None, :], b * scale + (beta - mean * scale)


def _pad_weight(w, r, c):
    return jnp.pad(w, ((0, r - w.shape[0]), (0, c - w.shape[1]))).astype(jnp.bfloat16)


def _pad_bias(b, c):
    return jnp.pad(b, (0, c - b.shape[0])).reshape(1, c).astype(jnp.float32)


def make_params(key, num_gin_layers, num_features, hidden_dims, num_classes, hw):
    c_pad = _round_up(num_features, LANE)
    params = {"gin": []}
    for idx in range(num_gin_layers):
        key, k1, k2 = jax.random.split(key, 3)
        in_dim = num_features if idx == 0 else hidden_dims[idx * 2 - 1]
        h1, h2 = hidden_dims[idx * 2], hidden_dims[idx * 2 + 1]
        w1, b1 = _linear_init(k1, in_dim, h1)
        w2, b2 = _linear_init(k2, h1, h2)
        w1, b1 = _fold_bn(w1, b1, h1)
        w2, b2 = _fold_bn(w2, b2, h2)
        din_p = _round_up(in_dim, LANE)
        dh_p = _round_up(h1, LANE)
        dout_p = _round_up(h2, LANE)
        params["gin"].append({
            "w1": _pad_weight(w1, din_p, dh_p), "b1": _pad_bias(b1, dh_p),
            "w2": _pad_weight(w2, dh_p, dout_p), "b2": _pad_bias(b2, dout_p)})

    # Gleason heads packed into one lane-dense weight -> single MXU pass.
    key, kp_, ks_ = jax.random.split(key, 3)
    d_last = _round_up(hidden_dims[-1], LANE)
    ch_pad = _round_up(num_classes, LANE)
    wp, bp = _linear_init(kp_, hidden_dims[-1], num_classes)
    ws, bs = _linear_init(ks_, hidden_dims[-1], num_classes)
    params["w_heads"] = jnp.concatenate(
        [_pad_weight(wp, d_last, ch_pad), _pad_weight(ws, d_last, ch_pad)], axis=1)
    params["b_heads"] = jnp.concatenate(
        [_pad_bias(bp, ch_pad), _pad_bias(bs, ch_pad)], axis=1)

    # Averaging projection for adaptive_avg_pool2d -> lane-dense bf16 features.
    chw = num_features * hw
    rows = jnp.arange(chw)
    pool_proj = jnp.zeros((chw, c_pad), jnp.float32).at[rows, rows // hw].set(1.0 / hw)
    params["pool_proj"] = pool_proj.astype(jnp.bfloat16)
    return params


# ----------------------------------------------------------------------------
# Full forward (glue in plain JAX, hot paths in Pallas kernels)
# ----------------------------------------------------------------------------
def seg_gini_graph_head_forward(params, x_nchw, edge_index, batch,
                                num_graphs, num_classes):
    n, c, hh, ww = x_nchw.shape
    chw = c * hh * ww
    cap, vmem_limit = _vmem_budget()

    c_pad = params["pool_proj"].shape[1]
    ch_pad = params["w_heads"].shape[1] // 2
    d_max = c_pad
    for p in params["gin"]:
        d_max = max(d_max, p["w1"].shape[0], p["w1"].shape[1], p["w2"].shape[1])

    n_pad = _round_up(max(n, LANE), LANE)
    tile = _pick_gin_tile(n_pad, d_max, cap, vmem_limit)
    pool_tile = _pick_pool_tile(n_pad, chw, c_pad, vmem_limit)

    # use_global_avg_pool=True branch: adaptive_avg_pool2d -> [N_pad, c_pad] bf16
    x2d = jnp.pad(x_nchw.reshape(n, chw), ((0, n_pad - n), (0, 0)))
    x = global_avg_pool(x2d, params["pool_proj"], pool_tile, vmem_limit)

    # Dense adjacency built directly in its storage dtype (int8; multiplicities
    # must stay <= 127), upcast to bf16 inside the GIN kernel.
    # TODO(synk): for very large N replace the dense O(N^2) adjacency with a
    # CSR neighbor-gather via PrefetchScalarGridSpec.
    src, dst = edge_index[0], edge_index[1]
    a = jnp.zeros((n_pad, n_pad), jnp.int8).at[dst, src].add(
        jnp.ones_like(dst, dtype=jnp.int8))

    for p in params["gin"]:
        x = gin_layer(a, x, p["w1"], p["b1"], p["w2"], p["b2"],
                      tile, tile, vmem_limit)

    # global_mean_pool as a normalized one-hot assignment matmul + fused heads.
    g_pad = _round_up(max(num_graphs, 8), 8)
    onehot = (batch[None, :] == jnp.arange(num_graphs)[:, None]).astype(jnp.float32)
    counts = jnp.maximum(onehot.sum(axis=1, keepdims=True), 1.0)
    pool = jnp.pad(onehot / counts,
                   ((0, g_pad - num_graphs), (0, n_pad - n))).astype(jnp.bfloat16)

    out = readout_and_heads(pool, x, params["w_heads"], params["b_heads"],
                            tile, vmem_limit)
    primary = out[:num_graphs, :num_classes]
    secondary = out[:num_graphs, ch_pad:ch_pad + num_classes]
    return primary, secondary


forward_jit = jax.jit(seg_gini_graph_head_forward, static_argnums=(4, 5))


# ----------------------------------------------------------------------------
# Pure-JAX reference (same math & same bf16 casts, no Pallas)
# ----------------------------------------------------------------------------
def _reference(params, x_nchw, edge_index, batch, num_graphs, num_classes):
    n, c, hh, ww = x_nchw.shape
    chw = c * hh * ww
    x = jnp.dot(x_nchw.reshape(n, chw).astype(jnp.bfloat16), params["pool_proj"],
                preferred_element_type=jnp.float32).astype(jnp.bfloat16)
    src, dst = edge_index[0], edge_index[1]
    a = jnp.zeros((n, n), jnp.float32).at[dst, src].add(1.0).astype(jnp.bfloat16)
    for p in params["gin"]:
        agg = jnp.dot(a, x, preferred_element_type=jnp.float32) + x.astype(jnp.float32)
        h = jnp.maximum(jnp.dot(agg.astype(jnp.bfloat16), p["w1"],
                                preferred_element_type=jnp.float32) + p["b1"], 0.0)
        x = jnp.maximum(jnp.dot(h.astype(jnp.bfloat16), p["w2"],
                                preferred_element_type=jnp.float32) + p["b2"], 0.0)
        x = x.astype(jnp.bfloat16)
    onehot = (batch[None, :] == jnp.arange(num_graphs)[:, None]).astype(jnp.float32)
    pool = (onehot / jnp.maximum(onehot.sum(axis=1, keepdims=True), 1.0)
            ).astype(jnp.bfloat16)
    g = jnp.dot(pool, x, preferred_element_type=jnp.float32).astype(jnp.bfloat16)
    out = (jnp.dot(g, params["w_heads"], preferred_element_type=jnp.float32)
           + params["b_heads"])
    ch_pad = params["w_heads"].shape[1] // 2
    return out[:, :num_classes], out[:, ch_pad:ch_pad + num_classes]


if __name__ == "__main__":
    key = jax.random.PRNGKey(0)

    # Small configuration consistent with the module's __init__:
    num_gin_layers = 2
    num_features = 4          # C
    hidden_dims = [16, 16, 32, 32]
    num_classes = 4
    num_graphs = 2
    nodes_per_graph = 4
    n_nodes = num_graphs * nodes_per_graph
    h = w = 8

    key, kx, kp = jax.random.split(key, 3)
    x = jax.random.normal(kx, (n_nodes, num_features, h, w), jnp.float32)

    # Undirected ring within each graph.
    srcs, dsts = [], []
    for g in range(num_graphs):
        base = g * nodes_per_graph
        for i in range(nodes_per_graph):
            a_, b_ = base + i, base + (i + 1) % nodes_per_graph
            srcs += [a_, b_]
            dsts += [b_, a_]
    edge_index = jnp.array([srcs, dsts], dtype=jnp.int32)
    batch = jnp.repeat(jnp.arange(num_graphs, dtype=jnp.int32), nodes_per_graph)

    params = make_params(kp, num_gin_layers, num_features, hidden_dims,
                         num_classes, h * w)

    primary, secondary = forward_jit(params, x, edge_index, batch,
                                     num_graphs, num_classes)
    jax.block_until_ready((primary, secondary))

    ref_p, ref_s = _reference(params, x, edge_index, batch, num_graphs, num_classes)
    assert primary.shape == (num_graphs, num_classes)
    assert secondary.shape == (num_graphs, num_classes)
    assert jnp.allclose(primary, ref_p, rtol=1e-2, atol=1e-2)
    assert jnp.allclose(secondary, ref_s, rtol=1e-2, atol=1e-2)

    print("KERNEL_OK")
</pallas_src>

<mosaic_0001>
module attributes {stable_mosaic.version = 11 : i64} {
  func.func @_pool_kernel(%arg0: i32, %arg1: memref<128x256xf32, #tpu.memory_space<vmem>>, %arg2: memref<256x128xbf16, #tpu.memory_space<vmem>>, %arg3: memref<128x128xbf16, #tpu.memory_space<vmem>>) attributes {dimension_semantics = [#tpu.dimension_semantics<parallel>], iteration_bounds = array<i64: 1>, scalar_prefetch = 0 : i64, scratch_operands = 0 : i64, tpu.core_type = #tpu.core_type<tc>, window_params = [{transform_indices = @transform_0, window_bounds = array<i64: 128, 256>}, {pipeline_mode = #tpu.pipeline_mode<synchronous>, transform_indices = @transform_1, window_bounds = array<i64: 256, 128>}, {transform_indices = @transform_2, window_bounds = array<i64: 128, 128>}]} {
    %c0 = arith.constant 0 : index
    %c0_0 = arith.constant 0 : index
    %0 = vector.load %arg1[%c0, %c0_0] : memref<128x256xf32, #tpu.memory_space<vmem>>, vector<128x256xf32>
    %1 = arith.truncf %0 : vector<128x256xf32> to vector<128x256xbf16>
    %c0_1 = arith.constant 0 : index
    %c0_2 = arith.constant 0 : index
    %2 = vector.load %arg2[%c0_1, %c0_2] : memref<256x128xbf16, #tpu.memory_space<vmem>>, vector<256x128xbf16>
    %cst = arith.constant dense<0.000000e+00> : vector<128x128xf32>
    %3 = tpu.matmul %1, %2, %cst {dimension_numbers = #tpu.dot_dimension_numbers<[1], [0], [0], [1], [0, 0, 1, 1], [], []>} : vector<128x256xbf16>, vector<256x128xbf16>, vector<128x128xf32> -> vector<128x128xf32>
    %4 = arith.truncf %3 : vector<128x128xf32> to vector<128x128xbf16>
    %c0_3 = arith.constant 0 : index
    %c0_4 = arith.constant 0 : index
    %5 = vector.load %arg3[%c0_3, %c0_4] : memref<128x128xbf16, #tpu.memory_space<vmem>>, vector<128x128xbf16>
    tpu.vector_store %arg3[%c0_3, %c0_4], %4 {strides = array<i32>} : memref<128x128xbf16, #tpu.memory_space<vmem>>, vector<128x128xbf16>,
    return
  }
  func.func @transform_0(%arg0: i32) -> (i32, i32) {
    %c0_i32 = arith.constant 0 : i32
    %c0_i32_0 = arith.constant 0 : i32
    return %arg0, %c0_i32 : i32, i32
  }
  func.func @transform_1(%arg0: i32) -> (i32, i32) {
    %c0_i32 = arith.constant 0 : i32
    %c0_i32_0 = arith.constant 0 : i32
    %c0_i32_1 = arith.constant 0 : i32
    return %c0_i32, %c0_i32_0 : i32, i32
  }
  func.func @transform_2(%arg0: i32) -> (i32, i32) {
    %c0_i32 = arith.constant 0 : i32
    %c0_i32_0 = arith.constant 0 : i32
    return %arg0, %c0_i32 : i32, i32
  }
}

module attributes {stable_mosaic.version = 11 : i64} {
  func.func @_gin_layer_kernel(%arg0: i32, %arg1: i32, %arg2: memref<128x128xi8, #tpu.memory_space<vmem>>, %arg3: memref<128x128xbf16, #tpu.memory_space<vmem>>, %arg4: memref<128x128xbf16, #tpu.memory_space<vmem>>, %arg5: memref<1x128xf32, #tpu.memory_space<vmem>>, %arg6: memref<128x128xbf16, #tpu.memory_space<vmem>>, %arg7: memref<1x128xf32, #tpu.memory_space<vmem>>, %arg8: memref<128x128xbf16, #tpu.memory_space<vmem>>, %arg9: memref<128x128xf32, #tpu.memory_space<vmem>>) attributes {dimension_semantics = [#tpu.dimension_semantics<parallel>, #tpu.dimension_semantics<arbitrary>], iteration_bounds = array<i64: 1, 1>, scalar_prefetch = 0 : i64, scratch_operands = 1 : i64, tpu.core_type = #tpu.core_type<tc>, window_params = [{transform_indices = @transform_0, window_bounds = array<i64: 128, 128>}, {pipeline_mode = #tpu.pipeline_mode<synchronous>, transform_indices = @transform_1, window_bounds = array<i64: 128, 128>}, {pipeline_mode = #tpu.pipeline_mode<synchronous>, transform_indices = @transform_2, window_bounds = array<i64: 128, 128>}, {pipeline_mode = #tpu.pipeline_mode<synchronous>, transform_indices = @transform_3, window_bounds = array<i64: 1, 128>}, {pipeline_mode = #tpu.pipeline_mode<synchronous>, transform_indices = @transform_4, window_bounds = array<i64: 128, 128>}, {pipeline_mode = #tpu.pipeline_mode<synchronous>, transform_indices = @transform_5, window_bounds = array<i64: 1, 128>}, {transform_indices = @transform_6, window_bounds = array<i64: 128, 128>}]} {
    %c0_i32 = arith.constant 0 : i32
    %0 = arith.cmpi eq, %arg1, %c0_i32 : i32
    %1 = arith.extui %0 : i1 to i32
    %c0_i32_0 = arith.constant 0 : i32
    %2 = arith.cmpi ne, %1, %c0_i32_0 : i32
    scf.if %2 {
      %c128_i32_9 = arith.constant 128 : i32
      %17 = arith.muli %arg0, %c128_i32_9 : i32
      %18 = tpu.assume_multiple %17, 128 : i32
      %19 = arith.index_cast %18 : i32 to index
      %c0_10 = arith.constant 0 : index
      %20 = vector.load %arg3[%19, %c0_10] : memref<128x128xbf16, #tpu.memory_space<vmem>>, vector<128x128xbf16>
      %21 = arith.extf %20 : vector<128x128xbf16> to vector<128x128xf32>
      %c0_11 = arith.constant 0 : index
      %c0_12 = arith.constant 0 : index
      %22 = vector.load %arg9[%c0_11, %c0_12] : memref<128x128xf32, #tpu.memory_space<vmem>>, vector<128x128xf32>
      tpu.vector_store %arg9[%c0_11, %c0_12], %21 {strides = array<i32>} : memref<128x128xf32, #tpu.memory_space<vmem>>, vector<128x128xf32>,
    } else {
    }
    %c0 = arith.constant 0 : index
    %c0_1 = arith.constant 0 : index
    %3 = vector.load %arg2[%c0, %c0_1] : memref<128x128xi8, #tpu.memory_space<vmem>>, vector<128x128xi8>
    %4 = arith.sitofp %3 : vector<128x128xi8> to vector<128x128xf32>
    %5 = arith.truncf %4 : vector<128x128xf32> to vector<128x128xbf16>
    %c128_i32 = arith.constant 128 : i32
    %6 = arith.muli %arg1, %c128_i32 : i32
    %7 = tpu.assume_multiple %6, 128 : i32
    %c0_2 = arith.constant 0 : index
    %c0_3 = arith.constant 0 : index
    %8 = vector.load %arg9[%c0_2, %c0_3] : memref<128x128xf32, #tpu.memory_space<vmem>>, vector<128x128xf32>
    %9 = arith.index_cast %7 : i32 to index
    %c0_4 = arith.constant 0 : index
    %10 = vector.load %arg3[%9, %c0_4] : memref<128x128xbf16, #tpu.memory_space<vmem>>, vector<128x128xbf16>
    %cst = arith.constant dense<0.000000e+00> : vector<128x128xf32>
    %11 = tpu.matmul %5, %10, %cst {dimension_numbers = #tpu.dot_dimension_numbers<[1], [0], [0], [1], [0, 0, 1, 1], [], []>} : vector<128x128xbf16>, vector<128x128xbf16>, vector<128x128xf32> -> vector<128x128xf32>
    %12 = arith.addf %8, %11 : vector<128x128xf32>
    %c0_5 = arith.constant 0 : index
    %c0_6 = arith.constant 0 : index
    %13 = vector.load %arg9[%c0_5, %c0_6] : memref<128x128xf32, #tpu.memory_space<vmem>>, vector<128x128xf32>
    tpu.vector_store %arg9[%c0_5, %c0_6], %12 {strides = array<i32>} : memref<128x128xf32, #tpu.memory_space<vmem>>, vector<128x128xf32>,
    %c0_i32_7 = arith.constant 0 : i32
    %14 = arith.cmpi eq, %arg1, %c0_i32_7 : i32
    %15 = arith.extui %14 : i1 to i32
    %c0_i32_8 = arith.constant 0 : i32
    %16 = arith.cmpi ne, %15, %c0_i32_8 : i32
    scf.if %16 {
      %c0_i32_9 = arith.constant 0 : i32
      %c128_i32_10 = arith.constant 128 : i32
      %17 = arith.muli %c0_i32_9, %c128_i32_10 : i32
      %18 = tpu.assume_multiple %17, 128 : i32
      %19 = arith.index_cast %18 : i32 to index
      %c0_11 = arith.constant 0 : index
      %20 = vector.load %arg9[%19, %c0_11] : memref<128x128xf32, #tpu.memory_space<vmem>>, vector<128x128xf32>
      %21 = arith.truncf %20 : vector<128x128xf32> to vector<128x128xbf16>
      %c0_12 = arith.constant 0 : index
      %c0_13 = arith.constant 0 : index
      %22 = vector.load %arg4[%c0_12, %c0_13] : memref<128x128xbf16, #tpu.memory_space<vmem>>, vector<128x128xbf16>
      %cst_14 = arith.constant dense<0.000000e+00> : vector<128x128xf32>
      %23 = tpu.matmul %21, %22, %cst_14 {dimension_numbers = #tpu.dot_dimension_numbers<[1], [0], [0], [1], [0, 0, 1, 1], [], []>} : vector<128x128xbf16>, vector<128x128xbf16>, vector<128x128xf32> -> vector<128x128xf32>
      %c0_15 = arith.constant 0 : index
      %c0_16 = arith.constant 0 : index
      %24 = vector.load %arg5[%c0_15, %c0_16] : memref<1x128xf32, #tpu.memory_space<vmem>>, vector<1x128xf32>
      %25 = vector.broadcast %24 : vector<1x128xf32> to vector<128x128xf32>
      %26 = arith.addf %23, %25 : vector<128x128xf32>
      %cst_17 = arith.constant 0.000000e+00 : f32
      %27 = vector.broadcast %cst_17 : f32 to vector<128x128xf32>
      %28 = arith.maximumf %26, %27 : vector<128x128xf32>
      %29 = arith.truncf %28 : vector<128x128xf32> to vector<128x128xbf16>
      %c0_18 = arith.constant 0 : index
      %c0_19 = arith.constant 0 : index
      %30 = vector.load %arg6[%c0_18, %c0_19] : memref<128x128xbf16, #tpu.memory_space<vmem>>, vector<128x128xbf16>
      %cst_20 = arith.constant dense<0.000000e+00> : vector<128x128xf32>
      %31 = tpu.matmul %29, %30, %cst_20 {dimension_numbers = #tpu.dot_dimension_numbers<[1], [0], [0], [1], [0, 0, 1, 1], [], []>} : vector<128x128xbf16>, vector<128x128xbf16>, vector<128x128xf32> -> vector<128x128xf32>
      %c0_21 = arith.constant 0 : index
      %c0_22 = arith.constant 0 : index
      %32 = vector.load %arg7[%c0_21, %c0_22] : memref<1x128xf32, #tpu.memory_space<vmem>>, vector<1x128xf32>
      %33 = vector.broadcast %32 : vector<1x128xf32> to vector<128x128xf32>
      %34 = arith.addf %31, %33 : vector<128x128xf32>
      %cst_23 = arith.constant 0.000000e+00 : f32
      %35 = vector.broadcast %cst_23 : f32 to vector<128x128xf32>
      %36 = arith.maximumf %34, %35 : vector<128x128xf32>
      %37 = arith.truncf %36 : vector<128x128xf32> to vector<128x128xbf16>
      %38 = arith.index_cast %18 : i32 to index
      %c0_24 = arith.constant 0 : index
      %39 = vector.load %arg8[%38, %c0_24] : memref<128x128xbf16, #tpu.memory_space<vmem>>, vector<128x128xbf16>
      tpu.vector_store %arg8[%38, %c0_24], %37 {strides = array<i32>} : memref<128x128xbf16, #tpu.memory_space<vmem>>, vector<128x128xbf16>,
      %c1_i32 = arith.constant 1 : i32
    } else {
    }
    return
  }
  func.func @transform_0(%arg0: i32, %arg1: i32) -> (i32, i32) {
    %c0_i32 = arith.constant 0 : i32
    return %arg0, %arg1 : i32, i32
  }
  func.func @transform_1(%arg0: i32, %arg1: i32) -> (i32, i32) {
    %c0_i32 = arith.constant 0 : i32
    %c0_i32_0 = arith.constant 0 : i32
    %c0_i32_1 = arith.constant 0 : i32
    return %c0_i32, %c0_i32_0 : i32, i32
  }
  func.func @transform_2(%arg0: i32, %arg1: i32) -> (i32, i32) {
    %c0_i32 = arith.constant 0 : i32
    %c0_i32_0 = arith.constant 0 : i32
    %c0_i32_1 = arith.constant 0 : i32
    return %c0_i32, %c0_i32_0 : i32, i32
  }
  func.func @transform_3(%arg0: i32, %arg1: i32) -> (i32, i32) {
    %c0_i32 = arith.constant 0 : i32
    %c0_i32_0 = arith.constant 0 : i32
    %c0_i32_1 = arith.constant 0 : i32
    return %c0_i32, %c0_i32_0 : i32, i32
  }
  func.func @transform_4(%arg0: i32, %arg1: i32) -> (i32, i32) {
    %c0_i32 = arith.constant 0 : i32
    %c0_i32_0 = arith.constant 0 : i32
    %c0_i32_1 = arith.constant 0 : i32
    return %c0_i32, %c0_i32_0 : i32, i32
  }
  func.func @transform_5(%arg0: i32, %arg1: i32) -> (i32, i32) {
    %c0_i32 = arith.constant 0 : i32
    %c0_i32_0 = arith.constant 0 : i32
    %c0_i32_1 = arith.constant 0 : i32
    return %c0_i32, %c0_i32_0 : i32, i32
  }
  func.func @transform_6(%arg0: i32, %arg1: i32) -> (i32, i32) {
    %c0_i32 = arith.constant 0 : i32
    %c0_i32_0 = arith.constant 0 : i32
    return %arg0, %c0_i32 : i32, i32
  }
}

module attributes {stable_mosaic.version = 11 : i64} {
  func.func @_readout_kernel(%arg0: i32, %arg1: memref<8x128xbf16, #tpu.memory_space<vmem>>, %arg2: memref<128x128xbf16, #tpu.memory_space<vmem>>, %arg3: memref<128x256xbf16, #tpu.memory_space<vmem>>, %arg4: memref<1x256xf32, #tpu.memory_space<vmem>>, %arg5: memref<8x256xf32, #tpu.memory_space<vmem>>, %arg6: memref<8x128xf32, #tpu.memory_space<vmem>>) attributes {dimension_semantics = [#tpu.dimension_semantics<arbitrary>], iteration_bounds = array<i64: 1>, scalar_prefetch = 0 : i64, scratch_operands = 1 : i64, tpu.core_type = #tpu.core_type<tc>, window_params = [{transform_indices = @transform_0, window_bounds = array<i64: 8, 128>}, {transform_indices = @transform_1, window_bounds = array<i64: 128, 128>}, {pipeline_mode = #tpu.pipeline_mode<synchronous>, transform_indices = @transform_2, window_bounds = array<i64: 128, 256>}, {pipeline_mode = #tpu.pipeline_mode<synchronous>, transform_indices = @transform_3, window_bounds = array<i64: 1, 256>}, {pipeline_mode = #tpu.pipeline_mode<synchronous>, transform_indices = @transform_4, window_bounds = array<i64: 8, 256>}]} {
    %c0_i32 = arith.constant 0 : i32
    %0 = arith.cmpi eq, %arg0, %c0_i32 : i32
    %1 = arith.extui %0 : i1 to i32
    %c0_i32_0 = arith.constant 0 : i32
    %2 = arith.cmpi ne, %1, %c0_i32_0 : i32
    scf.if %2 {
      %cst_10 = arith.constant 0.000000e+00 : f32
      %12 = vector.broadcast %cst_10 : f32 to vector<8x128xf32>
      %c0_11 = arith.constant 0 : index
      %c0_12 = arith.constant 0 : index
      %13 = vector.load %arg6[%c0_11, %c0_12] : memref<8x128xf32, #tpu.memory_space<vmem>>, vector<8x128xf32>
      tpu.vector_store %arg6[%c0_11, %c0_12], %12 {strides = array<i32>} : memref<8x128xf32, #tpu.memory_space<vmem>>, vector<8x128xf32>,
    } else {
    }
    %c0 = arith.constant 0 : index
    %c0_1 = arith.constant 0 : index
    %3 = vector.load %arg6[%c0, %c0_1] : memref<8x128xf32, #tpu.memory_space<vmem>>, vector<8x128xf32>
    %c0_2 = arith.constant 0 : index
    %c0_3 = arith.constant 0 : index
    %4 = vector.load %arg1[%c0_2, %c0_3] : memref<8x128xbf16, #tpu.memory_space<vmem>>, vector<8x128xbf16>
    %c0_4 = arith.constant 0 : index
    %c0_5 = arith.constant 0 : index
    %5 = vector.load %arg2[%c0_4, %c0_5] : memref<128x128xbf16, #tpu.memory_space<vmem>>, vector<128x128xbf16>
    %cst = arith.constant dense<0.000000e+00> : vector<8x128xf32>
    %6 = tpu.matmul %4, %5, %cst {dimension_numbers = #tpu.dot_dimension_numbers<[1], [0], [0], [1], [0, 0, 1, 1], [], []>} : vector<8x128xbf16>, vector<128x128xbf16>, vector<8x128xf32> -> vector<8x128xf32>
    %7 = arith.addf %3, %6 : vector<8x128xf32>
    %c0_6 = arith.constant 0 : index
    %c0_7 = arith.constant 0 : index
    %8 = vector.load %arg6[%c0_6, %c0_7] : memref<8x128xf32, #tpu.memory_space<vmem>>, vector<8x128xf32>
    tpu.vector_store %arg6[%c0_6, %c0_7], %7 {strides = array<i32>} : memref<8x128xf32, #tpu.memory_space<vmem>>, vector<8x128xf32>,
    %c0_i32_8 = arith.constant 0 : i32
    %9 = arith.cmpi eq, %arg0, %c0_i32_8 : i32
    %10 = arith.extui %9 : i1 to i32
    %c0_i32_9 = arith.constant 0 : i32
    %11 = arith.cmpi ne, %10, %c0_i32_9 : i32
    scf.if %11 {
      %c0_10 = arith.constant 0 : index
      %c0_11 = arith.constant 0 : index
      %12 = vector.load %arg6[%c0_10, %c0_11] : memref<8x128xf32, #tpu.memory_space<vmem>>, vector<8x128xf32>
      %13 = arith.truncf %12 : vector<8x128xf32> to vector<8x128xbf16>
      %c0_12 = arith.constant 0 : index
      %c0_13 = arith.constant 0 : index
      %14 = vector.load %arg3[%c0_12, %c0_13] : memref<128x256xbf16, #tpu.memory_space<vmem>>, vector<128x256xbf16>
      %cst_14 = arith.constant dense<0.000000e+00> : vector<8x256xf32>
      %15 = tpu.matmul %13, %14, %cst_14 {dimension_numbers = #tpu.dot_dimension_numbers<[1], [0], [0], [1], [0, 0, 1, 1], [], []>} : vector<8x128xbf16>, vector<128x256xbf16>, vector<8x256xf32> -> vector<8x256xf32>
      %c0_15 = arith.constant 0 : index
      %c0_16 = arith.constant 0 : index
      %16 = vector.load %arg4[%c0_15, %c0_16] : memref<1x256xf32, #tpu.memory_space<vmem>>, vector<1x256xf32>
      %17 = vector.broadcast %16 : vector<1x256xf32> to vector<8x256xf32>
      %18 = arith.addf %15, %17 : vector<8x256xf32>
      %c0_17 = arith.constant 0 : index
      %c0_18 = arith.constant 0 : index
      %19 = vector.load %arg5[%c0_17, %c0_18] : memref<8x256xf32, #tpu.memory_space<vmem>>, vector<8x256xf32>
      tpu.vector_store %arg5[%c0_17, %c0_18], %18 {strides = array<i32>} : memref<8x256xf32, #tpu.memory_space<vmem>>, vector<8x256xf32>,
    } else {
    }
    return
  }
  func.func @transform_0(%arg0: i32) -> (i32, i32) {
    %c0_i32 = arith.constant 0 : i32
    %c0_i32_0 = arith.constant 0 : i32
    return %c0_i32, %arg0 : i32, i32
  }
  func.func @transform_1(%arg0: i32) -> (i32, i32) {
    %c0_i32 = arith.constant 0 : i32
    %c0_i32_0 = arith.constant 0 : i32
    return %arg0, %c0_i32 : i32, i32
  }
  func.func @transform_2(%arg0: i32) -> (i32, i32) {
    %c0_i32 = arith.constant 0 : i32
    %c0_i32_0 = arith.constant 0 : i32
    %c0_i32_1 = arith.constant 0 : i32
    return %c0_i32, %c0_i32_0 : i32, i32
  }
  func.func @transform_3(%arg0: i32) -> (i32, i32) {
    %c0_i32 = arith.constant 0 : i32
    %c0_i32_0 = arith.constant 0 : i32
    %c0_i32_1 = arith.constant 0 : i32
    return %c0_i32, %c0_i32_0 : i32, i32
  }
  func.func @transform_4(%arg0: i32) -> (i32, i32) {
    %c0_i32 = arith.constant 0 : i32
    %c0_i32_0 = arith.constant 0 : i32
    %c0_i32_1 = arith.constant 0 : i32
    return %c0_i32, %c0_i32_0 : i32, i32
  }
}

</mosaic_0001>

<bundles_post_ra>
// kernel: seg_gini_graph_head_forward.4
= control target key start
LH: loop header
LB: loop body
LE: loop exit
PB: predicated region body
PF: predicated region fallthrough
CT: control target
= control target key end

     0   :  { %s743_s1 = inlined_call_operand.vmem [shape: bf16[256,128], index: 1, kind: input, shape index: {}]   ;;  %s744_s0 = inlined_call_operand.vmem [shape: f32[128,256], index: 0, kind: input, shape index: {}]   ;;  %s745_s2 = inlined_call_operand.vmem [shape: bf16[128,128], index: 2, kind: output, shape index: {}]  }
   0x1   :  { %v544_v0 = vld [vmem:[%s743_s1 + $0x40] sm:$0xff]   ;;  %v546_v2 = vld [vmem:[%s743_s1 + $0x48] sm:$0xff]   ;;  %v548_v4 = vld [vmem:[%s743_s1 + $0x50] sm:$0xff]  }
   0x2   :  { %v545_v1 = vld [vmem:[%s743_s1] sm:$0xff]   ;;  %464 = vmatprep.subr.bf16.mxu0 %v544_v0  ;;  %528 = vmatprep.subr.bf16.mxu1 %v544_v0  ;;  %v547_v3 = vld [vmem:[%s743_s1 + $0x8] sm:$0xff]   ;;  %v549_v5 = vld [vmem:[%s743_s1 + $0x10] sm:$0xff]  }
   0x3   :  { %465 = vmatpush3.bf16.msra.mxu0 %v545_v1  ;;  %536 = vmatpush3.bf16.msra.mxu1 %v545_v1  ;;  %v550_v6 = vld [vmem:[%s743_s1 + $0x58] sm:$0xff]   ;;  %v552_v8 = vld [vmem:[%s743_s1 + $0x60] sm:$0xff]   ;;  %v554_v10 = vld [vmem:[%s743_s1 + $0x68] sm:$0xff]  }
   0x4   :  { %466 = vmatprep.subr.bf16.mxu0 %v546_v2  ;;  %529 = vmatprep.subr.bf16.mxu1 %v546_v2  ;;  %v551_v7 = vld [vmem:[%s743_s1 + $0x18] sm:$0xff]   ;;  %v553_v9 = vld [vmem:[%s743_s1 + $0x20] sm:$0xff]   ;;  %v13_v11 = vld [vmem:[%s744_s0 + $0x8] sm:$0xff] }
   0x5   :  { %v15_v12 = vld [vmem:[%s744_s0 + $0x18] sm:$0xff]  ;;  %v29_v13 = vld [vmem:[%s744_s0 + $0x88] sm:$0xff]  ;;  %v556_v18 = vld [vmem:[%s743_s1 + $0x70] sm:$0xff]  }
   0x6   :  { %v45_v14 = vpack.c.bf16 %v15_v12, %v13_v11  ;;  %v31_v15 = vld [vmem:[%s744_s0 + $0x98] sm:$0xff]  ;;  %v555_v17 = vld [vmem:[%s743_s1 + $0x28] sm:$0xff]   ;;  %v557_v19 = vld [vmem:[%s743_s1 + $0x30] sm:$0xff]  }
   0x7   :  { %467 = vmatpush3.bf16.msra.mxu0 %v547_v3  ;;  %537 = vmatpush3.bf16.msra.mxu1 %v547_v3  ;;  %v53_v16 = vpack.c.bf16 %v31_v15, %v29_v13  ;;  %v558_v20 = vld [vmem:[%s743_s1 + $0x78] sm:$0xff]   ;;  %v12_v22 = vld [vmem:[%s744_s0] sm:$0xff]  ;;  %v14_v23 = vld [vmem:[%s744_s0 + $0x10] sm:$0xff] }
   0x8   :  { %468 = vmatprep.subr.bf16.mxu0 %v548_v4  ;;  %530 = vmatprep.subr.bf16.mxu1 %v548_v4  ;;  %v559_v21 = vld [vmem:[%s743_s1 + $0x38] sm:$0xff]   ;;  %v28_v24 = vld [vmem:[%s744_s0 + $0x80] sm:$0xff]  ;;  %v30_v25 = vld [vmem:[%s744_s0 + $0x90] sm:$0xff]  ;;  %v44_v30 = vpack.c.bf16 %v14_v23, %v12_v22 }
   0x9   :  { %220 = vmatprep.mubr.bf16.mxu0 %v45_v14  ;;  %252 = vmatprep.mubr.bf16.mxu1 %v53_v16  ;;  %v17_v26 = vld [vmem:[%s744_s0 + $0x28] sm:$0xff]  ;;  %v19_v27 = vld [vmem:[%s744_s0 + $0x38] sm:$0xff]  ;;  %v52_v31 = vpack.c.bf16 %v30_v25, %v28_v24  ;;  %v16_v34 = vld [vmem:[%s744_s0 + $0x20] sm:$0xff] }
   0xa   :  { %v33_v28 = vld [vmem:[%s744_s0 + $0xa8] sm:$0xff]  ;;  %v35_v29 = vld [vmem:[%s744_s0 + $0xb8] sm:$0xff]  ;;  %v47_v32 = vpack.c.bf16 %v19_v27, %v17_v26  ;;  %v18_v35 = vld [vmem:[%s744_s0 + $0x30] sm:$0xff] }
   0xb   :  { %469 = vmatpush3.bf16.msra.mxu0 %v549_v5  ;;  %538 = vmatpush3.bf16.msra.mxu1 %v549_v5  ;;  %v55_v33 = vpack.c.bf16 %v35_v29, %v33_v28  ;;  %v32_v36 = vld [vmem:[%s744_s0 + $0xa0] sm:$0xff]  ;;  %v34_v37 = vld [vmem:[%s744_s0 + $0xb0] sm:$0xff]  ;;  %v21_v38 = vld [vmem:[%s744_s0 + $0x48] sm:$0xff]  ;;  %v46_v42 = vpack.c.bf16 %v18_v35, %v16_v34 }
   0xc   :  { %470 = vmatprep.subr.bf16.mxu0 %v550_v6  ;;  %531 = vmatprep.subr.bf16.mxu1 %v550_v6  ;;  %v23_v39 = vld [vmem:[%s744_s0 + $0x58] sm:$0xff]  ;;  %v37_v40 = vld [vmem:[%s744_s0 + $0xc8] sm:$0xff]  ;;  %v54_v43 = vpack.c.bf16 %v34_v37, %v32_v36  ;;  %v20_v46 = vld [vmem:[%s744_s0 + $0x40] sm:$0xff] }
   0xd   :  { %v39_v41 = vld [vmem:[%s744_s0 + $0xd8] sm:$0xff]  ;;  %v49_v44 = vpack.c.bf16 %v23_v39, %v21_v38  ;;  %v22_v47 = vld [vmem:[%s744_s0 + $0x50] sm:$0xff]  ;;  %v36_v48 = vld [vmem:[%s744_s0 + $0xc0] sm:$0xff] }
   0xe   :  { %v57_v45 = vpack.c.bf16 %v39_v41, %v37_v40  ;;  %v38_v49 = vld [vmem:[%s744_s0 + $0xd0] sm:$0xff]  ;;  %v25_v50 = vld [vmem:[%s744_s0 + $0x68] sm:$0xff]  ;;  %v27_v51 = vld [vmem:[%s744_s0 + $0x78] sm:$0xff]  ;;  %v48_v54 = vpack.c.bf16 %v22_v47, %v20_v46 }
   0xf   :  { %471 = vmatpush3.bf16.msra.mxu0 %v551_v7  ;;  %539 = vmatpush3.bf16.msra.mxu1 %v551_v7  ;;  %v41_v52 = vld [vmem:[%s744_s0 + $0xe8] sm:$0xff]  ;;  %v43_v53 = vld [vmem:[%s744_s0 + $0xf8] sm:$0xff]  ;;  %v56_v55 = vpack.c.bf16 %v38_v49, %v36_v48  ;;  %v51_v56 = vpack.c.bf16 %v27_v51, %v25_v50  ;;  %v24_v58 = vld [vmem:[%s744_s0 + $0x60] sm:$0xff] }
  0x10   :  { %472 = vmatprep.subr.bf16.mxu0 %v552_v8  ;;  %532 = vmatprep.subr.bf16.mxu1 %v552_v8  ;;  %v59_v57 = vpack.c.bf16 %v43_v53, %v41_v52  ;;  %v26_v59 = vld [vmem:[%s744_s0 + $0x70] sm:$0xff]  ;;  %v40_v60 = vld [vmem:[%s744_s0 + $0xe0] sm:$0xff] }
  0x11   :  { %v42_v61 = vld [vmem:[%s744_s0 + $0xf0] sm:$0xff]  ;;  %v50_v62 = vpack.c.bf16 %v26_v59, %v24_v58 }
  0x12   :  { %v58_v63 = vpack.c.bf16 %v42_v61, %v40_v60 }
  0x13   :  { %473 = vmatpush3.bf16.msra.mxu0 %v553_v9  ;;  %540 = vmatpush3.bf16.msra.mxu1 %v553_v9 }
  0x14   :  { %474 = vmatprep.subr.bf16.mxu0 %v554_v10  ;;  %533 = vmatprep.subr.bf16.mxu1 %v554_v10 }
  0x17   :  { %475 = vmatpush3.bf16.msra.mxu0 %v555_v17  ;;  %541 = vmatpush3.bf16.msra.mxu1 %v555_v17 }
  0x18   :  { %476 = vmatprep.subr.bf16.mxu0 %v556_v18  ;;  %534 = vmatprep.subr.bf16.mxu1 %v556_v18 }
  0x1b   :  { %477 = vmatpush3.bf16.msra.mxu0 %v557_v19  ;;  %542 = vmatpush3.bf16.msra.mxu1 %v557_v19 }
  0x1c   :  { %478 = vmatprep.subr.bf16.mxu0 %v558_v20  ;;  %535 = vmatprep.subr.bf16.mxu1 %v558_v20 }
  0x1f   :  { %479 = vmatpush3.bf16.msra.mxu0 %v559_v21  ;;  %543 = vmatpush3.bf16.msra.mxu1 %v559_v21 }
  0x22   :  { %221 = vmatmul.mubr.bf16.vlgmr.msra.gmra.mrb[0].mxu0 %v44_v30  ;;  %253 = vmatmul.mubr.bf16.vlgmr.msra.gmra.mrb[0].mxu1 %v52_v31 }
  0x23   :  { %228 = vmatprep.mubr.bf16.mxu0 %v47_v32  ;;  %260 = vmatprep.mubr.bf16.mxu1 %v55_v33 }
  0x2a   :  { %229 = vmatmul.mubr.bf16.gmra.mrb[4].mxu0 %v46_v42  ;;  %261 = vmatmul.mubr.bf16.gmra.mrb[4].mxu1 %v54_v43 }
  0x2b   :  { %236 = vmatprep.mubr.bf16.mxu0 %v49_v44  ;;  %268 = vmatprep.mubr.bf16.mxu1 %v57_v45 }
  0x32   :  { %237 = vmatmul.mubr.bf16.gmra.mrb[8].mxu0 %v48_v54  ;;  %269 = vmatmul.mubr.bf16.gmra.mrb[8].mxu1 %v56_v55 }
  0x33   :  { %244 = vmatprep.mubr.bf16.mxu0 %v51_v56  ;;  %276 = vmatprep.mubr.bf16.mxu1 %v59_v57 }
  0x3a   :  { %245 = vmatmul.mubr.bf16.gmra.mrb[12].mxu0 %v50_v62  ;;  %277 = vmatmul.mubr.bf16.gmra.mrb[12].mxu1 %v58_v63 }
  0xf5   :  { %v480_v0 = vpop.f32.mrb[0].mxu0  ;;  %v504_v1 = vpop.f32.mrb[0].mxu1 }
  0xf6   :  { %v481_v2 = vpop.f32.mrb[1].mxu0  ;;  %v505_v3 = vpop.f32.mrb[1].mxu1 }
  0xf7   :  { %v482_v4 = vadd.f32 %v481_v2, %v480_v0  ;;  %v506_v5 = vadd.f32 %v505_v3, %v504_v1  ;;  %v483_v6 = vpop.f32.mrb[2].mxu0  ;;  %v507_v7 = vpop.f32.mrb[2].mxu1 }
  0xf8   :  { %v484_v8 = vpop.f32.mrb[3].mxu0  ;;  %v508_v9 = vpop.f32.mrb[3].mxu1 }
  0xf9   :  { %v485_v10 = vadd.f32 %v484_v8, %v483_v6  ;;  %v509_v11 = vadd.f32 %v508_v9, %v507_v7 }
  0xfb   :  { %v420_v12 = vpack.c.bf16 %v485_v10, %v482_v4  ;;  %v440_v13 = vpack.c.bf16 %v509_v11, %v506_v5 }
  0xfd   :  { %421 = vst [vmem:[%s745_s2] sm:$0xff] %v420_v12   ;;  %460 = vst [vmem:[%s745_s2 + $0x20] sm:$0xff] %v440_v13   ;;  %v486_v14 = vpop.f32.mrb[4].mxu0  ;;  %v510_v15 = vpop.f32.mrb[4].mxu1 }
  0xfe   :  { %v487_v16 = vpop.f32.mrb[5].mxu0  ;;  %v511_v17 = vpop.f32.mrb[5].mxu1 }
  0xff   :  { %v488_v18 = vadd.f32 %v487_v16, %v486_v14  ;;  %v512_v19 = vadd.f32 %v511_v17, %v510_v15  ;;  %v489_v20 = vpop.f32.mrb[6].mxu0  ;;  %v513_v21 = vpop.f32.mrb[6].mxu1 }
 0x100   :  { %v490_v22 = vpop.f32.mrb[7].mxu0  ;;  %v514_v23 = vpop.f32.mrb[7].mxu1 }
 0x101   :  { %v491_v24 = vadd.f32 %v490_v22, %v489_v20  ;;  %v515_v25 = vadd.f32 %v514_v23, %v513_v21 }
 0x103   :  { %v425_v26 = vpack.c.bf16 %v491_v24, %v488_v18  ;;  %v445_v27 = vpack.c.bf16 %v515_v25, %v512_v19 }
 0x105   :  { %457 = vst [vmem:[%s745_s2 + $0x8] sm:$0xff] %v425_v26   ;;  %461 = vst [vmem:[%s745_s2 + $0x28] sm:$0xff] %v445_v27   ;;  %v492_v28 = vpop.f32.mrb[8].mxu0  ;;  %v516_v29 = vpop.f32.mrb[8].mxu1 }
 0x106   :  { %v493_v30 = vpop.f32.mrb[9].mxu0  ;;  %v517_v31 = vpop.f32.mrb[9].mxu1 }
 0x107   :  { %v494_v32 = vadd.f32 %v493_v30, %v492_v28  ;;  %v518_v33 = vadd.f32 %v517_v31, %v516_v29  ;;  %v495_v34 = vpop.f32.mrb[10].mxu0  ;;  %v519_v35 = vpop.f32.mrb[10].mxu1 }
 0x108   :  { %v496_v36 = vpop.f32.mrb[11].mxu0  ;;  %v520_v37 = vpop.f32.mrb[11].mxu1 }
 0x109   :  { %v497_v38 = vadd.f32 %v496_v36, %v495_v34  ;;  %v521_v39 = vadd.f32 %v520_v37, %v519_v35 }
 0x10b   :  { %v430_v40 = vpack.c.bf16 %v497_v38, %v494_v32  ;;  %v450_v41 = vpack.c.bf16 %v521_v39, %v518_v33 }
 0x10d   :  { %458 = vst [vmem:[%s745_s2 + $0x10] sm:$0xff] %v430_v40   ;;  %462 = vst [vmem:[%s745_s2 + $0x30] sm:$0xff] %v450_v41   ;;  %v498_v42 = vpop.f32.mrb[12].mxu0  ;;  %v522_v43 = vpop.f32.mrb[12].mxu1 }
 0x10e   :  { %v499_v44 = vpop.f32.mrb[13].mxu0  ;;  %v523_v45 = vpop.f32.mrb[13].mxu1 }
 0x10f   :  { %v500_v46 = vadd.f32 %v499_v44, %v498_v42  ;;  %v524_v47 = vadd.f32 %v523_v45, %v522_v43  ;;  %v501_v48 = vpop.f32.mrb[14].mxu0  ;;  %v525_v49 = vpop.f32.mrb[14].mxu1 }
 0x110   :  { %v502_v50 = vpop.f32.mrb[15].mxu0  ;;  %v526_v51 = vpop.f32.mrb[15].mxu1 }
 0x111   :  { %v503_v52 = vadd.f32 %v502_v50, %v501_v48  ;;  %v527_v53 = vadd.f32 %v526_v51, %v525_v49 }
 0x113   :  { %v435_v54 = vpack.c.bf16 %v503_v52, %v500_v46  ;;  %v455_v55 = vpack.c.bf16 %v527_v53, %v524_v47 }
 0x115   :  { %459 = vst [vmem:[%s745_s2 + $0x18] sm:$0xff] %v435_v54   ;;  %463 = vst [vmem:[%s745_s2 + $0x38] sm:$0xff] %v455_v55  }

// kernel: seg_gini_graph_head_forward.7
= control target key start
LH: loop header
LB: loop body
LE: loop exit
PB: predicated region body
PF: predicated region fallthrough
CT: control target
= control target key end

     0   :  { %v379_v0 = vmov 0.0   ;;  %vm380_vm0 = vmmov 0   ;;  %v381_v26 = vmov 0   ;;  %v154_v32 = vlaneseq  ;;  %s491_s1 = inlined_call_operand.vmem [shape: bf16[128,128], index: 1, kind: input, shape index: {}]   ;;  %s492_s2 = inlined_call_operand.vmem [shape: bf16[128,256], index: 2, kind: input, shape index: {}]   ;;  %s493_s0 = inlined_call_operand.vmem [shape: bf16[8,128], index: 0, kind: input, shape index: {}]   ;;  %s494_s3 = inlined_call_operand.vmem [shape: f32[1,256], index: 3, kind: input, shape index: {}]   ;;  %s495_s4 = inlined_call_operand.vmem [shape: f32[8,256], index: 4, kind: output, shape index: {}]  }
   0x1   :  { %324 = vmatprep.subr.bf16.mxu0 %v379_v0  ;;  %v347_v1 = vld [vmem:[%s491_s1] sm:$0xff]   ;;  %340 = vmatprep.mubr.msk.bf16.mxu0 %vm380_vm0, %v379_v0  ;;  %v348_v2 = vld [vmem:[%s491_s1 + $0x8] sm:$0xff]   ;;  %v349_v3 = vld [vmem:[%s491_s1 + $0x10] sm:$0xff]  }
   0x2   :  { %325 = vmatpush3.bf16.msra.mxu0 %v347_v1  ;;  %v355_v4 = vld [vmem:[%s492_s2 + $0x4] ss:$8 sps:$4 sm:$0xff]   ;;  %v357_v5 = vld [vmem:[%s492_s2] ss:$8 sps:$4 sm:$0xff]   ;;  %v350_v6 = vld [vmem:[%s491_s1 + $0x18] sm:$0xff]   ;;  %276 = vmatprep.mubr.bf16.mxu1 %v381_v26  ;;  %v155_v33 = vshrl.u32 %v154_v32, 7 }
   0x3   :  { %326 = vmatprep.subr.bf16.mxu0 %v379_v0  ;;  %v358_v7 = vld [vmem:[%s492_s2 + $0x14] ss:$8 sps:$4 sm:$0xff]   ;;  %244 = vmatprep.subr.bf16.mxu1 %v355_v4  ;;  %v360_v8 = vld [vmem:[%s492_s2 + $0x10] ss:$8 sps:$4 sm:$0xff]   ;;  %v361_v9 = vld [vmem:[%s492_s2 + $0x24] ss:$8 sps:$4 sm:$0xff]  }
   0x4   :  { %245 = vmatpush1.bf16.msra.mxu1 %v357_v5  ;;  %v351_v10 = vld [vmem:[%s491_s1 + $0x20] sm:$0xff]   ;;  %v364_v12 = vld [vmem:[%s492_s2 + $0x34] ss:$8 sps:$4 sm:$0xff]   ;;  %v352_v13 = vld [vmem:[%s491_s1 + $0x28] sm:$0xff]   ;;  %v156_v34 = vsub.s32 0, %v155_v33  ;;  %v160_v36 = vsub.s32 1, %v155_v33 }
   0x5   :  { %246 = vmatprep.subr.bf16.mxu1 %v358_v7  ;;  %v363_v11 = vld [vmem:[%s492_s2 + $0x20] ss:$8 sps:$4 sm:$0xff]   ;;  %v366_v14 = vld [vmem:[%s492_s2 + $0x30] ss:$8 sps:$4 sm:$0xff]   ;;  %v367_v15 = vld [vmem:[%s492_s2 + $0x44] ss:$8 sps:$4 sm:$0xff]  }
   0x6   :  { %327 = vmatpush3.bf16.msra.mxu0 %v348_v2  ;;  %v353_v16 = vld [vmem:[%s491_s1 + $0x30] sm:$0xff]   ;;  %v369_v17 = vld [vmem:[%s492_s2 + $0x40] ss:$8 sps:$4 sm:$0xff]   ;;  %v354_v19 = vld [vmem:[%s491_s1 + $0x38] sm:$0xff]  }
   0x7   :  { %328 = vmatprep.subr.bf16.mxu0 %v379_v0  ;;  %v370_v18 = vld [vmem:[%s492_s2 + $0x54] ss:$8 sps:$4 sm:$0xff]   ;;  %v372_v20 = vld [vmem:[%s492_s2 + $0x50] ss:$8 sps:$4 sm:$0xff]   ;;  %v373_v21 = vld [vmem:[%s492_s2 + $0x64] ss:$8 sps:$4 sm:$0xff]  }
   0x8   :  { %247 = vmatpush1.bf16.msra.mxu1 %v360_v8  ;;  %v24_v22 = vld [vmem:[%s493_s0] sm:$0xf]  ;;  %v376_v24 = vld [vmem:[%s492_s2 + $0x74] ss:$8 sps:$4 sm:$0xff]   ;;  %v378_v25 = vld [vmem:[%s492_s2 + $0x70] ss:$8 sps:$4 sm:$0xff]  }
   0x9   :  { %248 = vmatprep.subr.bf16.mxu1 %v361_v9  ;;  %v375_v23 = vld [vmem:[%s492_s2 + $0x60] ss:$8 sps:$4 sm:$0xff]  }
   0xa   :  { %329 = vmatpush3.bf16.msra.mxu0 %v349_v3  ;;  %v152_v35 = vld [vmem:[%s494_s3] sm:$0x3] }
   0xb   :  { %330 = vmatprep.subr.bf16.mxu0 %v379_v0  ;;  %v157_v37 = vrot.slane %v152_v35, %v156_v34  ;;  %v161_v38 = vrot.slane %v152_v35, %v160_v36 }
   0xc   :  { %249 = vmatpush1.bf16.msra.mxu1 %v363_v11 }
   0xd   :  { %250 = vmatprep.subr.bf16.mxu1 %v364_v12 }
   0xe   :  { %331 = vmatpush3.bf16.msra.mxu0 %v350_v6 }
   0xf   :  { %332 = vmatprep.subr.bf16.mxu0 %v379_v0 }
  0x10   :  { %251 = vmatpush1.bf16.msra.mxu1 %v366_v14 }
  0x11   :  { %252 = vmatprep.subr.bf16.mxu1 %v367_v15 }
  0x12   :  { %333 = vmatpush3.bf16.msra.mxu0 %v351_v10 }
  0x13   :  { %334 = vmatprep.subr.bf16.mxu0 %v379_v0 }
  0x14   :  { %253 = vmatpush1.bf16.msra.mxu1 %v369_v17 }
  0x15   :  { %254 = vmatprep.subr.bf16.mxu1 %v370_v18 }
  0x16   :  { %335 = vmatpush3.bf16.msra.mxu0 %v352_v13 }
  0x17   :  { %336 = vmatprep.subr.bf16.mxu0 %v379_v0 }
  0x18   :  { %255 = vmatpush1.bf16.msra.mxu1 %v372_v20 }
  0x19   :  { %256 = vmatprep.subr.bf16.mxu1 %v373_v21 }
  0x1a   :  { %337 = vmatpush3.bf16.msra.mxu0 %v353_v16 }
  0x1b   :  { %338 = vmatprep.subr.bf16.mxu0 %v379_v0 }
  0x1c   :  { %257 = vmatpush1.bf16.msra.mxu1 %v375_v23 }
  0x1d   :  { %258 = vmatprep.subr.bf16.mxu1 %v376_v24 }
  0x1e   :  { %339 = vmatpush3.bf16.msra.mxu0 %v354_v19 }
  0x20   :  { %259 = vmatpush1.bf16.msra.mxu1 %v378_v25 }
  0x21   :  { %341 = vmatmul.mubr.bf16.vlgmr.msra.gmra.mrb[0].mxu0 %v24_v22 }
  0xf4   :  { %v123_v27 = vpop.f32.mrb[0].mxu0 }
  0xf5   :  { %v135_v28 = vpack.c.bf16 %v123_v27, %v123_v27  ;;  %v342_v29 = vpop.f32.mrb[1].mxu0 }
  0xf6   :  { %v126_v30 = vpop.f32.mrb[2].mxu0 }
  0xf7   :  { %v343_v31 = vpop.f32.mrb[3].mxu0  ;;  %277 = vmatmul.mubr.bf16.vlgmr.msra.gmra.mrb[0].mxu1 %v135_v28 }
 0x1ca   :  { %v278_v39 = vpop.f32.mrb[0].mxu1 }
 0x1cb   :  { %v279_v40 = vadd.f32 %v278_v39, %v157_v37  ;;  %v280_v41 = vpop.f32.mrb[1].mxu1 }
 0x1cc   :  { %v281_v42 = vadd.f32 %v280_v41, %v161_v38  ;;  %v282_v43 = vpop.f32.mrb[2].mxu1 }
 0x1cd   :  { %285 = vst [vmem:[%s495_s4] sm:$0xff] %v279_v40  ;;  %v283_v44 = vpop.f32.mrb[3].mxu1 }
 0x1ce   :  { %286 = vst [vmem:[%s495_s4 + $0x8] sm:$0xff] %v281_v42 }

// kernel: seg_gini_graph_head_forward.5
= control target key start
LH: loop header
LB: loop body
LE: loop exit
PB: predicated region body
PF: predicated region fallthrough
CT: control target
= control target key end

     0   :  { %s1429_s1 = inlined_call_operand.vmem [shape: bf16[128,128], index: 1, kind: input, shape index: {}]   ;;  %s1430_s0 = inlined_call_operand.vmem [shape: s8[128,128], index: 0, kind: input, shape index: {}]   ;;  %s1431_s2 = inlined_call_operand.vmem [shape: bf16[128,128], index: 2, kind: input, shape index: {}]   ;;  %s1432_s4 = inlined_call_operand.vmem [shape: bf16[128,128], index: 4, kind: input, shape index: {}]   ;;  %s1433_s3 = inlined_call_operand.vmem [shape: f32[1,128], index: 3, kind: input, shape index: {}]   ;;  %s1434_s5 = inlined_call_operand.vmem [shape: f32[1,128], index: 5, kind: input, shape index: {}]   ;;  %s1435_s6 = inlined_call_operand.vmem [shape: bf16[128,128], index: 6, kind: output, shape index: {}]  }
   0x1   :  { %v1178_v0 = vld [vmem:[%s1429_s1] sm:$0xff]   ;;  %v1179_v1 = vld [vmem:[%s1429_s1 + $0x8] sm:$0xff]   ;;  %v1180_v2 = vld [vmem:[%s1429_s1 + $0x10] sm:$0xff]  }
   0x2   :  { %1066 = vmatprep.subr.bf16.mxu0 %v1178_v0  ;;  %v1181_v3 = vld [vmem:[%s1429_s1 + $0x18] sm:$0xff]   ;;  %v81_v4 = vld [vmem:[%s1430_s0] sm:$0x3]  ;;  %v82_v5 = vld [vmem:[%s1430_s0 + $0x2] sm:$0x3] }
   0x3   :  { %1067 = vmatpush3.bf16.msra.mxu0 %v1178_v0  ;;  %v97_v6 = vunpack.c.l.s8.bf16 %v81_v4  ;;  %v98_v7 = vunpack.c.l.s8.bf16 %v82_v5  ;;  %v1182_v9 = vld [vmem:[%s1429_s1 + $0x20] sm:$0xff]   ;;  %v1187_v11 = vld [vmem:[%s1431_s2 + $0x8] sm:$0xff]   ;;  %v1188_v13 = vld [vmem:[%s1431_s2 + $0x10] sm:$0xff]  }
   0x4   :  { %1068 = vmatprep.subr.bf16.mxu0 %v1179_v1  ;;  %v1186_v10 = vld [vmem:[%s1431_s2] sm:$0xff]   ;;  %v1183_v12 = vld [vmem:[%s1429_s1 + $0x28] sm:$0xff]   ;;  %v1184_v14 = vld [vmem:[%s1429_s1 + $0x30] sm:$0xff]  }
   0x5   :  { %v866_v8 = vcombine.low %v97_v6, %v98_v7  ;;  %1098 = vmatprep.subr.bf16.mxu1 %v1186_v10  ;;  %v1189_v15 = vld [vmem:[%s1431_s2 + $0x18] sm:$0xff]   ;;  %v83_v16 = vld [vmem:[%s1430_s0 + $0x4] sm:$0x3]  ;;  %v84_v17 = vld [vmem:[%s1430_s0 + $0x6] sm:$0x3] }
   0x6   :  { %1099 = vmatpush3.bf16.msra.mxu1 %v1186_v10  ;;  %v1185_v18 = vld [vmem:[%s1429_s1 + $0x38] sm:$0xff]   ;;  %v85_v19 = vld [vmem:[%s1430_s0 + $0x8] sm:$0x3]  ;;  %v86_v20 = vld [vmem:[%s1430_s0 + $0xa] sm:$0x3]  ;;  %v99_v21 = vunpack.c.l.s8.bf16 %v83_v16  ;;  %v100_v22 = vunpack.c.l.s8.bf16 %v84_v17 }
   0x7   :  { %1069 = vmatpush3.bf16.msra.mxu0 %v1179_v1  ;;  %1082 = vmatprep.mubr.bf16.mxu0 %v866_v8  ;;  %v1190_v23 = vld [vmem:[%s1431_s2 + $0x20] sm:$0xff]   ;;  %v101_v24 = vunpack.c.l.s8.bf16 %v85_v19  ;;  %v102_v25 = vunpack.c.l.s8.bf16 %v86_v20  ;;  %v1191_v27 = vld [vmem:[%s1431_s2 + $0x28] sm:$0xff]   ;;  %v89_v31 = vld [vmem:[%s1430_s0 + $0x10] sm:$0x3] }
   0x8   :  { %1070 = vmatprep.subr.bf16.mxu0 %v1180_v2  ;;  %1100 = vmatprep.subr.bf16.mxu1 %v1187_v11  ;;  %v867_v26 = vcombine.low %v99_v21, %v100_v22  ;;  %v87_v29 = vld [vmem:[%s1430_s0 + $0xc] sm:$0x3]  ;;  %v88_v30 = vld [vmem:[%s1430_s0 + $0xe] sm:$0x3]  ;;  %v90_v32 = vld [vmem:[%s1430_s0 + $0x12] sm:$0x3]  ;;  %v105_v35 = vunpack.c.l.s8.bf16 %v89_v31 }
   0x9   :  { %v868_v28 = vcombine.low %v101_v24, %v102_v25  ;;  %v103_v33 = vunpack.c.l.s8.bf16 %v87_v29  ;;  %v104_v34 = vunpack.c.l.s8.bf16 %v88_v30  ;;  %v106_v36 = vunpack.c.l.s8.bf16 %v90_v32  ;;  %v91_v39 = vld [vmem:[%s1430_s0 + $0x14] sm:$0x3]  ;;  %v92_v40 = vld [vmem:[%s1430_s0 + $0x16] sm:$0x3]  ;;  %v93_v41 = vld [vmem:[%s1430_s0 + $0x18] sm:$0x3] }
   0xa   :  { %1101 = vmatpush3.bf16.msra.mxu1 %v1187_v11  ;;  %v94_v42 = vld [vmem:[%s1430_s0 + $0x1a] sm:$0x3]  ;;  %v107_v43 = vunpack.c.l.s8.bf16 %v91_v39  ;;  %v108_v44 = vunpack.c.l.s8.bf16 %v92_v40  ;;  %v109_v45 = vunpack.c.l.s8.bf16 %v93_v41  ;;  %v95_v49 = vld [vmem:[%s1430_s0 + $0x1c] sm:$0x3]  ;;  %v96_v50 = vld [vmem:[%s1430_s0 + $0x1e] sm:$0x3] }
   0xb   :  { %1071 = vmatpush3.bf16.msra.mxu0 %v1180_v2  ;;  %1102 = vmatprep.subr.bf16.mxu1 %v1188_v13  ;;  %v869_v37 = vcombine.low %v103_v33, %v104_v34  ;;  %v870_v38 = vcombine.low %v105_v35, %v106_v36  ;;  %v110_v46 = vunpack.c.l.s8.bf16 %v94_v42  ;;  %v111_v51 = vunpack.c.l.s8.bf16 %v95_v49  ;;  %v1192_v54 = vld [vmem:[%s1431_s2 + $0x30] sm:$0xff]   ;;  %v1193_v55 = vld [vmem:[%s1431_s2 + $0x38] sm:$0xff]   ;;  %v1194_v56 = vld [vmem:[%s1432_s4] sm:$0xff]  }
   0xc   :  { %1072 = vmatprep.subr.bf16.mxu0 %v1181_v3  ;;  %v871_v47 = vcombine.low %v107_v43, %v108_v44  ;;  %v112_v52 = vunpack.c.l.s8.bf16 %v96_v50  ;;  %v1195_v57 = vld [vmem:[%s1432_s4 + $0x8] sm:$0xff]   ;;  %v1196_v58 = vld [vmem:[%s1432_s4 + $0x10] sm:$0xff]   ;;  %v1345_v59 = vld [vmem:[%s1432_s4 + $0x18] sm:$0xff]  }
   0xd   :  { %v872_v48 = vcombine.low %v109_v45, %v110_v46  ;;  %v1351_v60 = vld [vmem:[%s1432_s4 + $0x20] sm:$0xff]   ;;  %v1358_v61 = vld [vmem:[%s1432_s4 + $0x28] sm:$0xff]   ;;  %v1010_v44 = vld [vmem:[%s1429_s1 + $0x38] sm:$0xff]  }
   0xe   :  { %1103 = vmatpush3.bf16.msra.mxu1 %v1188_v13  ;;  %v873_v53 = vcombine.low %v111_v51, %v112_v52  ;;  %v1004_v62 = vld [vmem:[%s1429_s1 + $0x8] sm:$0xff]   ;;  %v933_v63 = vld [vmem:[%s1429_s1] sm:$0xff]   ;;  %v1009_v46 = vld [vmem:[%s1429_s1 + $0x30] sm:$0xff]   ;;  %v963_v49 = vunpack.c.h.bf16 %v1010_v44 }
   0xf   :  { %1073 = vmatpush3.bf16.msra.mxu0 %v1181_v3  ;;  %1104 = vmatprep.subr.bf16.mxu1 %v1189_v15  ;;  %v938_v0 = vunpack.c.l.bf16 %v1004_v62  ;;  %v939_v1 = vunpack.c.h.bf16 %v1004_v62  ;;  %v934_v3 = vunpack.c.l.bf16 %v933_v63  ;;  %v935_v4 = vunpack.c.h.bf16 %v933_v63  ;;  %v1007_v30 = vld [vmem:[%s1429_s1 + $0x20] sm:$0xff]  }
  0x10   :  { %1074 = vmatprep.subr.bf16.mxu0 %v1182_v9  ;;  %v950_v35 = vunpack.c.l.bf16 %v1007_v30  ;;  %v951_v36 = vunpack.c.h.bf16 %v1007_v30  ;;  %v958_v51 = vunpack.c.l.bf16 %v1009_v46  ;;  %v959_v52 = vunpack.c.h.bf16 %v1009_v46 }
  0x12   :  { %1105 = vmatpush3.bf16.msra.mxu1 %v1189_v15 }
  0x13   :  { %1075 = vmatpush3.bf16.msra.mxu0 %v1182_v9  ;;  %1106 = vmatprep.subr.bf16.mxu1 %v1190_v23 }
  0x14   :  { %1076 = vmatprep.subr.bf16.mxu0 %v1183_v12 }
  0x16   :  { %1107 = vmatpush3.bf16.msra.mxu1 %v1190_v23 }
  0x17   :  { %1077 = vmatpush3.bf16.msra.mxu0 %v1183_v12  ;;  %1108 = vmatprep.subr.bf16.mxu1 %v1191_v27  ;;  %v1006_v12 = vld [vmem:[%s1429_s1 + $0x18] sm:$0xff]  }
  0x18   :  { %1078 = vmatprep.subr.bf16.mxu0 %v1184_v14  ;;  %v946_v16 = vunpack.c.l.bf16 %v1006_v12  ;;  %v947_v17 = vunpack.c.h.bf16 %v1006_v12 }
  0x1a   :  { %1109 = vmatpush3.bf16.msra.mxu1 %v1191_v27 }
  0x1b   :  { %1079 = vmatpush3.bf16.msra.mxu0 %v1184_v14  ;;  %1110 = vmatprep.subr.bf16.mxu1 %v1192_v54  ;;  %v1005_v14 = vld [vmem:[%s1429_s1 + $0x10] sm:$0xff]  }
  0x1c   :  { %1080 = vmatprep.subr.bf16.mxu0 %v1185_v18  ;;  %v942_v19 = vunpack.c.l.bf16 %v1005_v14  ;;  %v943_v20 = vunpack.c.h.bf16 %v1005_v14 }
  0x1e   :  { %1111 = vmatpush3.bf16.msra.mxu1 %v1192_v54 }
  0x1f   :  { %1081 = vmatpush3.bf16.msra.mxu0 %v1185_v18  ;;  %1112 = vmatprep.subr.bf16.mxu1 %v1193_v55 }
  0x20   :  { %1130 = vmatprep.subr.bf16.mxu0 %v1194_v56 }
  0x22   :  { %1083 = vmatmul.mubr.bf16.vlgmr.msra.gmra.mrb[0].mxu0 %v867_v26  ;;  %1113 = vmatpush3.bf16.msra.mxu1 %v1193_v55 }
  0x23   :  { %1086 = vmatprep.mubr.bf16.mxu0 %v868_v28  ;;  %1162 = vmatprep.subr.bf16.mxu1 %v1194_v56  ;;  %v1008_v28 = vld [vmem:[%s1429_s1 + $0x28] sm:$0xff]  }
  0x24   :  { %1131 = vmatpush3.bf16.msra.mxu0 %v1194_v56  ;;  %v954_v32 = vunpack.c.l.bf16 %v1008_v28  ;;  %v955_v33 = vunpack.c.h.bf16 %v1008_v28 }
  0x25   :  { %1132 = vmatprep.subr.bf16.mxu0 %v1195_v57 }
  0x28   :  { %1133 = vmatpush3.bf16.msra.mxu0 %v1195_v57 }
  0x29   :  { %1134 = vmatprep.subr.bf16.mxu0 %v1196_v58 }
  0x2a   :  { %1087 = vmatmul.mubr.bf16.gmra.mrb[4].mxu0 %v869_v37 }
  0x2b   :  { %1090 = vmatprep.mubr.bf16.mxu0 %v870_v38 }
  0x2c   :  { %1135 = vmatpush3.bf16.msra.mxu0 %v1196_v58 }
  0x2d   :  { %1136 = vmatprep.subr.bf16.mxu0 %v1345_v59 }
  0x30   :  { %1137 = vmatpush3.bf16.msra.mxu0 %v1345_v59 }
  0x31   :  { %1138 = vmatprep.subr.bf16.mxu0 %v1351_v60 }
  0x32   :  { %1091 = vmatmul.mubr.bf16.gmra.mrb[8].mxu0 %v871_v47 }
  0x33   :  { %1094 = vmatprep.mubr.bf16.mxu0 %v872_v48  ;;  %v962_v48 = vunpack.c.l.bf16 %v1010_v44 }
  0x34   :  { %1139 = vmatpush3.bf16.msra.mxu0 %v1351_v60 }
  0x35   :  { %1140 = vmatprep.subr.bf16.mxu0 %v1358_v61 }
  0x38   :  { %1141 = vmatpush3.bf16.msra.mxu0 %v1358_v61 }
  0x3a   :  { %1095 = vmatmul.mubr.bf16.gmra.mrb[12].mxu0 %v873_v53 }
  0xf5   :  { %v1084_v2 = vpop.f32.mrb[0].mxu0 }
  0xf6   :  { %v280_v5 = vpop.f32.mrb[1].mxu0  ;;  %v345_v7 = vadd.f32 %v1084_v2, %v938_v0  ;;  %v1200_v0 = vld [vmem:[%s1432_s4 + $0x30] sm:$0xff]  }
  0xf7   :  { %v1085_v6 = vpop.f32.mrb[2].mxu0  ;;  %v343_v10 = vadd.f32 %v934_v3, %v280_v5  ;;  %1142 = vmatprep.subr.bf16.mxu0 %v1200_v0 }
  0xf8   :  { %v346_v8 = vadd.f32 %v1085_v6, %v939_v1  ;;  %v283_v9 = vpop.f32.mrb[3].mxu0  ;;  %1143 = vmatpush3.bf16.msra.mxu0 %v1200_v0 }
  0xf9   :  { %v344_v11 = vadd.f32 %v935_v4, %v283_v9 }
  0xfa   :  { %v395_v13 = vpack.c.bf16 %v346_v8, %v345_v7 }
  0xfb   :  { %v394_v15 = vpack.c.bf16 %v344_v11, %v343_v10 }
  0xfd   :  { %v1088_v18 = vpop.f32.mrb[4].mxu0  ;;  %1114 = vmatprep.mubr.bf16.mxu1 %v394_v15 }
  0xfe   :  { %v296_v21 = vpop.f32.mrb[5].mxu0  ;;  %1115 = vmatmul.mubr.bf16.vlgmr.msra.gmra.mrb[0].mxu1 %v395_v13  ;;  %v349_v23 = vadd.f32 %v1088_v18, %v946_v16 }
  0xff   :  { %v1089_v22 = vpop.f32.mrb[6].mxu0  ;;  %1170 = vmatpush3.bf16.msra.mxu1 %v1194_v56  ;;  %v347_v26 = vadd.f32 %v942_v19, %v296_v21 }
 0x100   :  { %v350_v24 = vadd.f32 %v1089_v22, %v947_v17  ;;  %v299_v25 = vpop.f32.mrb[7].mxu0  ;;  %1163 = vmatprep.subr.bf16.mxu1 %v1195_v57 }
 0x101   :  { %v348_v27 = vadd.f32 %v943_v20, %v299_v25 }
 0x102   :  { %v397_v29 = vpack.c.bf16 %v350_v24, %v349_v23 }
 0x103   :  { %v396_v31 = vpack.c.bf16 %v348_v27, %v347_v26  ;;  %1171 = vmatpush3.bf16.msra.mxu1 %v1195_v57 }
 0x104   :  { %1164 = vmatprep.subr.bf16.mxu1 %v1196_v58 }
 0x105   :  { %v1092_v34 = vpop.f32.mrb[8].mxu0  ;;  %1118 = vmatprep.mubr.bf16.mxu1 %v396_v31 }
 0x106   :  { %v312_v37 = vpop.f32.mrb[9].mxu0  ;;  %1119 = vmatmul.mubr.bf16.gmra.mrb[4].mxu1 %v397_v29  ;;  %v353_v39 = vadd.f32 %v1092_v34, %v954_v32 }
 0x107   :  { %v1093_v38 = vpop.f32.mrb[10].mxu0  ;;  %1172 = vmatpush3.bf16.msra.mxu1 %v1196_v58  ;;  %v351_v42 = vadd.f32 %v950_v35, %v312_v37 }
 0x108   :  { %v354_v40 = vadd.f32 %v1093_v38, %v955_v33  ;;  %v315_v41 = vpop.f32.mrb[11].mxu0  ;;  %1165 = vmatprep.subr.bf16.mxu1 %v1345_v59 }
 0x109   :  { %v352_v43 = vadd.f32 %v951_v36, %v315_v41 }
 0x10a   :  { %v399_v45 = vpack.c.bf16 %v354_v40, %v353_v39 }
 0x10b   :  { %v398_v47 = vpack.c.bf16 %v352_v43, %v351_v42  ;;  %1173 = vmatpush3.bf16.msra.mxu1 %v1345_v59 }
 0x10c   :  { %1166 = vmatprep.subr.bf16.mxu1 %v1351_v60 }
 0x10d   :  { %v1096_v50 = vpop.f32.mrb[12].mxu0  ;;  %1122 = vmatprep.mubr.bf16.mxu1 %v398_v47 }
 0x10e   :  { %v328_v53 = vpop.f32.mrb[13].mxu0  ;;  %1123 = vmatmul.mubr.bf16.gmra.mrb[8].mxu1 %v399_v45  ;;  %v357_v55 = vadd.f32 %v1096_v50, %v962_v48 }
 0x10f   :  { %v1097_v54 = vpop.f32.mrb[14].mxu0  ;;  %1174 = vmatpush3.bf16.msra.mxu1 %v1351_v60  ;;  %v355_v58 = vadd.f32 %v958_v51, %v328_v53  ;;  %v1201_v60 = vld [vmem:[%s1432_s4 + $0x38] sm:$0xff]  }
 0x110   :  { %v358_v56 = vadd.f32 %v1097_v54, %v963_v49  ;;  %v331_v57 = vpop.f32.mrb[15].mxu0  ;;  %1167 = vmatprep.subr.bf16.mxu1 %v1358_v61  ;;  %1144 = vmatprep.subr.bf16.mxu0 %v1201_v60 }
 0x111   :  { %v356_v59 = vadd.f32 %v959_v52, %v331_v57  ;;  %1145 = vmatpush3.bf16.msra.mxu0 %v1201_v60  ;;  %v891_v57 = vld [vmem:[%s1434_s5] ss:$0 sm:$0xff] }
 0x112   :  { %v401_v62 = vpack.c.bf16 %v358_v56, %v357_v55 }
 0x113   :  { %v400_v63 = vpack.c.bf16 %v356_v59, %v355_v58  ;;  %1175 = vmatpush3.bf16.msra.mxu1 %v1358_v61  ;;  %v882_v61 = vld [vmem:[%s1433_s3] ss:$0 sm:$0xff] }
 0x114   :  { %1168 = vmatprep.subr.bf16.mxu1 %v1200_v0 }
 0x115   :  { %1126 = vmatprep.mubr.bf16.mxu1 %v400_v63 }
 0x116   :  { %1127 = vmatmul.mubr.bf16.gmra.mrb[12].mxu1 %v401_v62 }
 0x117   :  { %1176 = vmatpush3.bf16.msra.mxu1 %v1200_v0 }
 0x118   :  { %1169 = vmatprep.subr.bf16.mxu1 %v1201_v60 }
 0x11b   :  { %1177 = vmatpush3.bf16.msra.mxu1 %v1201_v60 }
 0x1d1   :  { %v1116_v1 = vpop.f32.mrb[0].mxu1 }
 0x1d2   :  { %v516_v2 = vadd.f32 %v1116_v1, %v882_v61  ;;  %v507_v3 = vpop.f32.mrb[1].mxu1 }
 0x1d3   :  { %v508_v4 = vadd.f32 %v882_v61, %v507_v3  ;;  %v1117_v5 = vpop.f32.mrb[2].mxu1 }
 0x1d4   :  { %v519_v6 = vadd.f32 %v1117_v5, %v882_v61  ;;  %v510_v7 = vpop.f32.mrb[3].mxu1  ;;  %v572_v9 = vmax.f32 %v516_v2, 0.0 }
 0x1d5   :  { %v511_v8 = vadd.f32 %v882_v61, %v510_v7  ;;  %v570_v11 = vmax.f32 %v508_v4, 0.0 }
 0x1d6   :  { %v573_v10 = vmax.f32 %v519_v6, 0.0 }
 0x1d7   :  { %v571_v12 = vmax.f32 %v511_v8, 0.0 }
 0x1d8   :  { %v587_v13 = vpack.c.bf16 %v573_v10, %v572_v9 }
 0x1d9   :  { %v586_v14 = vpack.c.bf16 %v571_v12, %v570_v11  ;;  %v1120_v15 = vpop.f32.mrb[4].mxu1 }
 0x1da   :  { %v532_v16 = vadd.f32 %v1120_v15, %v882_v61  ;;  %v523_v17 = vpop.f32.mrb[5].mxu1 }
 0x1db   :  { %v524_v18 = vadd.f32 %v882_v61, %v523_v17  ;;  %v1121_v19 = vpop.f32.mrb[6].mxu1  ;;  %1146 = vmatprep.mubr.bf16.mxu0 %v586_v14 }
 0x1dc   :  { %v535_v20 = vadd.f32 %v1121_v19, %v882_v61  ;;  %v526_v21 = vpop.f32.mrb[7].mxu1  ;;  %1147 = vmatmul.mubr.bf16.vlgmr.msra.gmra.mrb[16].mxu0 %v587_v13  ;;  %v576_v23 = vmax.f32 %v532_v16, 0.0 }
 0x1dd   :  { %v527_v22 = vadd.f32 %v882_v61, %v526_v21  ;;  %v574_v25 = vmax.f32 %v524_v18, 0.0 }
 0x1de   :  { %v577_v24 = vmax.f32 %v535_v20, 0.0 }
 0x1df   :  { %v575_v26 = vmax.f32 %v527_v22, 0.0 }
 0x1e0   :  { %v589_v27 = vpack.c.bf16 %v577_v24, %v576_v23 }
 0x1e1   :  { %v588_v28 = vpack.c.bf16 %v575_v26, %v574_v25  ;;  %v1124_v29 = vpop.f32.mrb[8].mxu1 }
 0x1e2   :  { %v548_v30 = vadd.f32 %v1124_v29, %v882_v61  ;;  %v539_v31 = vpop.f32.mrb[9].mxu1 }
 0x1e3   :  { %v540_v32 = vadd.f32 %v882_v61, %v539_v31  ;;  %v1125_v33 = vpop.f32.mrb[10].mxu1  ;;  %1150 = vmatprep.mubr.bf16.mxu0 %v588_v28 }
 0x1e4   :  { %v551_v34 = vadd.f32 %v1125_v33, %v882_v61  ;;  %v542_v35 = vpop.f32.mrb[11].mxu1  ;;  %1151 = vmatmul.mubr.bf16.gmra.mrb[20].mxu0 %v589_v27  ;;  %v580_v37 = vmax.f32 %v548_v30, 0.0 }
 0x1e5   :  { %v543_v36 = vadd.f32 %v882_v61, %v542_v35  ;;  %v578_v39 = vmax.f32 %v540_v32, 0.0 }
 0x1e6   :  { %v581_v38 = vmax.f32 %v551_v34, 0.0 }
 0x1e7   :  { %v579_v40 = vmax.f32 %v543_v36, 0.0 }
 0x1e8   :  { %v591_v41 = vpack.c.bf16 %v581_v38, %v580_v37 }
 0x1e9   :  { %v590_v42 = vpack.c.bf16 %v579_v40, %v578_v39  ;;  %v1128_v43 = vpop.f32.mrb[12].mxu1 }
 0x1ea   :  { %v564_v44 = vadd.f32 %v1128_v43, %v882_v61  ;;  %v555_v45 = vpop.f32.mrb[13].mxu1 }
 0x1eb   :  { %v556_v46 = vadd.f32 %v882_v61, %v555_v45  ;;  %v1129_v47 = vpop.f32.mrb[14].mxu1  ;;  %1154 = vmatprep.mubr.bf16.mxu1 %v590_v42 }
 0x1ec   :  { %v567_v48 = vadd.f32 %v1129_v47, %v882_v61  ;;  %v558_v49 = vpop.f32.mrb[15].mxu1  ;;  %1155 = vmatmul.mubr.bf16.vlgmr.msra.gmra.mrb[16].mxu1 %v591_v41  ;;  %v584_v51 = vmax.f32 %v564_v44, 0.0 }
 0x1ed   :  { %v559_v50 = vadd.f32 %v882_v61, %v558_v49  ;;  %v582_v53 = vmax.f32 %v556_v46, 0.0 }
 0x1ee   :  { %v585_v52 = vmax.f32 %v567_v48, 0.0 }
 0x1ef   :  { %v583_v54 = vmax.f32 %v559_v50, 0.0 }
 0x1f0   :  { %v593_v55 = vpack.c.bf16 %v585_v52, %v584_v51 }
 0x1f1   :  { %v592_v56 = vpack.c.bf16 %v583_v54, %v582_v53 }
 0x1f3   :  { %1158 = vmatprep.mubr.bf16.mxu1 %v592_v56 }
 0x1f4   :  { %1159 = vmatmul.mubr.bf16.gmra.mrb[20].mxu1 %v593_v55 }
 0x2af   :  { %v1148_v58 = vpop.f32.mrb[16].mxu0 }
 0x2b0   :  { %v708_v59 = vadd.f32 %v1148_v58, %v891_v57  ;;  %v699_v62 = vpop.f32.mrb[17].mxu0 }
 0x2b1   :  { %v700_v63 = vadd.f32 %v891_v57, %v699_v62  ;;  %v1149_v0 = vpop.f32.mrb[18].mxu0 }
 0x2b2   :  { %v711_v60 = vadd.f32 %v1149_v0, %v891_v57  ;;  %v702_v1 = vpop.f32.mrb[19].mxu0  ;;  %v764_v2 = vmax.f32 %v708_v59, 0.0 }
 0x2b3   :  { %v703_v61 = vadd.f32 %v891_v57, %v702_v1  ;;  %v762_v4 = vmax.f32 %v700_v63, 0.0 }
 0x2b4   :  { %v765_v3 = vmax.f32 %v711_v60, 0.0 }
 0x2b5   :  { %v763_v5 = vmax.f32 %v703_v61, 0.0 }
 0x2b6   :  { %v972_v6 = vpack.c.bf16 %v765_v3, %v764_v2 }
 0x2b7   :  { %v967_v7 = vpack.c.bf16 %v763_v5, %v762_v4  ;;  %v1152_v8 = vpop.f32.mrb[20].mxu0 }
 0x2b8   :  { %1011 = vst [vmem:[%s1435_s6 + $0x8] sm:$0xff] %v972_v6   ;;  %v724_v9 = vadd.f32 %v1152_v8, %v891_v57  ;;  %v715_v10 = vpop.f32.mrb[21].mxu0 }
 0x2b9   :  { %968 = vst [vmem:[%s1435_s6] sm:$0xff] %v967_v7   ;;  %v716_v11 = vadd.f32 %v891_v57, %v715_v10  ;;  %v1153_v12 = vpop.f32.mrb[22].mxu0 }
 0x2ba   :  { %v727_v13 = vadd.f32 %v1153_v12, %v891_v57  ;;  %v718_v14 = vpop.f32.mrb[23].mxu0  ;;  %v768_v16 = vmax.f32 %v724_v9, 0.0 }
 0x2bb   :  { %v719_v15 = vadd.f32 %v891_v57, %v718_v14  ;;  %v766_v18 = vmax.f32 %v716_v11, 0.0 }
 0x2bc   :  { %v769_v17 = vmax.f32 %v727_v13, 0.0 }
 0x2bd   :  { %v767_v19 = vmax.f32 %v719_v15, 0.0 }
 0x2be   :  { %v982_v20 = vpack.c.bf16 %v769_v17, %v768_v16 }
 0x2bf   :  { %v977_v21 = vpack.c.bf16 %v767_v19, %v766_v18  ;;  %v1156_v22 = vpop.f32.mrb[16].mxu1 }
 0x2c0   :  { %1013 = vst [vmem:[%s1435_s6 + $0x18] sm:$0xff] %v982_v20   ;;  %v740_v23 = vadd.f32 %v1156_v22, %v891_v57  ;;  %v731_v24 = vpop.f32.mrb[17].mxu1 }
 0x2c1   :  { %1012 = vst [vmem:[%s1435_s6 + $0x10] sm:$0xff] %v977_v21   ;;  %v732_v25 = vadd.f32 %v891_v57, %v731_v24  ;;  %v1157_v26 = vpop.f32.mrb[18].mxu1 }
 0x2c2   :  { %v743_v27 = vadd.f32 %v1157_v26, %v891_v57  ;;  %v734_v28 = vpop.f32.mrb[19].mxu1  ;;  %v772_v30 = vmax.f32 %v740_v23, 0.0 }
 0x2c3   :  { %v735_v29 = vadd.f32 %v891_v57, %v734_v28  ;;  %v770_v32 = vmax.f32 %v732_v25, 0.0 }
 0x2c4   :  { %v773_v31 = vmax.f32 %v743_v27, 0.0 }
 0x2c5   :  { %v771_v33 = vmax.f32 %v735_v29, 0.0 }
 0x2c6   :  { %v992_v34 = vpack.c.bf16 %v773_v31, %v772_v30 }
 0x2c7   :  { %v987_v35 = vpack.c.bf16 %v771_v33, %v770_v32  ;;  %v1160_v36 = vpop.f32.mrb[20].mxu1 }
 0x2c8   :  { %1015 = vst [vmem:[%s1435_s6 + $0x28] sm:$0xff] %v992_v34   ;;  %v756_v37 = vadd.f32 %v1160_v36, %v891_v57  ;;  %v747_v38 = vpop.f32.mrb[21].mxu1 }
 0x2c9   :  { %1014 = vst [vmem:[%s1435_s6 + $0x20] sm:$0xff] %v987_v35   ;;  %v748_v39 = vadd.f32 %v891_v57, %v747_v38  ;;  %v1161_v40 = vpop.f32.mrb[22].mxu1 }
 0x2ca   :  { %v759_v41 = vadd.f32 %v1161_v40, %v891_v57  ;;  %v750_v42 = vpop.f32.mrb[23].mxu1  ;;  %v776_v44 = vmax.f32 %v756_v37, 0.0 }
 0x2cb   :  { %v751_v43 = vadd.f32 %v891_v57, %v750_v42  ;;  %v774_v46 = vmax.f32 %v748_v39, 0.0 }
 0x2cc   :  { %v777_v45 = vmax.f32 %v759_v41, 0.0 }
 0x2cd   :  { %v775_v47 = vmax.f32 %v751_v43, 0.0 }
 0x2ce   :  { %v1002_v48 = vpack.c.bf16 %v777_v45, %v776_v44 }
 0x2cf   :  { %v997_v49 = vpack.c.bf16 %v775_v47, %v774_v46 }
 0x2d0   :  { %1017 = vst [vmem:[%s1435_s6 + $0x38] sm:$0xff] %v1002_v48  }
 0x2d1   :  { %1016 = vst [vmem:[%s1435_s6 + $0x30] sm:$0xff] %v997_v49  }

</bundles_post_ra>
